<compile_context>
chip_gen: v7x
topology: tpu7x:2x2x1
jax: 0.10.0
libtpu: 0.0.40
codegen_flags: <defaults>
</compile_context>

<pallas_src>
import functools
import math

import jax
import jax.numpy as jnp
from jax.experimental import pallas as pl
from jax.experimental.pallas import tpu as pltpu

N_HEADS = 8  # hard-coded in the PyTorch module


def _round_up(x, m):
    return (x + m - 1) // m * m


# ----------------------------------------------------------------------------
# Fused linear: y = act(x @ W + b) [+ residual], tiled over rows
# ----------------------------------------------------------------------------
def _linear_kernel(x_ref, w_ref, b_ref, o_ref, *, activation):
    y = (jnp.dot(x_ref[...].astype(jnp.float32),
                 w_ref[...].astype(jnp.float32),
                 preferred_element_type=jnp.float32)
         + b_ref[...].astype(jnp.float32))
    if activation == "relu":
        y = jnp.maximum(y, 0.0)
    o_ref[...] = y.astype(o_ref.dtype)


def _linear_res_kernel(x_ref, w_ref, b_ref, res_ref, o_ref, *, activation):
    y = (jnp.dot(x_ref[...].astype(jnp.float32),
                 w_ref[...].astype(jnp.float32),
                 preferred_element_type=jnp.float32)
         + b_ref[...].astype(jnp.float32))
    if activation == "relu":
        y = jnp.maximum(y, 0.0)
    y = y + res_ref[...].astype(jnp.float32)
    o_ref[...] = y.astype(o_ref.dtype)


def pallas_linear(x, w, b, activation=None, residual=None, *, tm=256):
    """y = act(x @ w + b) (+ residual).  x:(M,K), w:(K,N), b:(N,) or (1,N)."""
    M, K = x.shape
    Kw, N = w.shape
    assert K == Kw
    b2 = b.reshape(1, N)

    tm_eff = min(tm, _round_up(M, 8))
    m_pad = _round_up(M, tm_eff)
    if m_pad != M:
        x = jnp.pad(x, ((0, m_pad - M), (0, 0)))
        if residual is not None:
            residual = jnp.pad(residual, ((0, m_pad - M), (0, 0)))
    nm = m_pad // tm_eff

    in_specs = [
        pl.BlockSpec((tm_eff, K), lambda i: (i, 0)),
        pl.BlockSpec((K, N), lambda i: (0, 0)),     # grid-invariant weight
        pl.BlockSpec((1, N), lambda i: (0, 0)),     # grid-invariant bias
    ]
    operands = [x, w, b2]
    if residual is not None:
        in_specs.append(pl.BlockSpec((tm_eff, N), lambda i: (i, 0)))
        operands.append(residual)
        kernel = functools.partial(_linear_res_kernel, activation=activation)
    else:
        kernel = functools.partial(_linear_kernel, activation=activation)

    out = pl.pallas_call(
        kernel,
        out_shape=jax.ShapeDtypeStruct((m_pad, N), x.dtype),
        grid_spec=pltpu.PrefetchScalarGridSpec(
            num_scalar_prefetch=0,
            grid=(nm,),
            in_specs=in_specs,
            out_specs=pl.BlockSpec((tm_eff, N), lambda i: (i, 0)),
        ),
        compiler_params=pltpu.CompilerParams(
            dimension_semantics=("parallel",)),
    )(*operands)
    return out[:M]


# ----------------------------------------------------------------------------
# Fused 2-layer MLP: y = act2(act1(x @ W1 + b1) @ W2 + b2), tiled over rows
# ----------------------------------------------------------------------------
def _mlp2_kernel(x_ref, w1_ref, b1_ref, w2_ref, b2_ref, o_ref, *, act1, act2):
    h = (jnp.dot(x_ref[...].astype(jnp.float32),
                 w1_ref[...].astype(jnp.float32),
                 preferred_element_type=jnp.float32)
         + b1_ref[...].astype(jnp.float32))
    if act1 == "relu":
        h = jnp.maximum(h, 0.0)
    y = (jnp.dot(h, w2_ref[...].astype(jnp.float32),
                 preferred_element_type=jnp.float32)
         + b2_ref[...].astype(jnp.float32))
    if act2 == "relu":
        y = jnp.maximum(y, 0.0)
    o_ref[...] = y.astype(o_ref.dtype)


def pallas_mlp2(x, w1, b1, w2, b2, act1="relu", act2=None, *, tm=256):
    M, K = x.shape
    K1, H1 = w1.shape
    H1b, N = w2.shape
    assert K == K1 and H1 == H1b
    b1r = b1.reshape(1, H1)
    b2r = b2.reshape(1, N)

    tm_eff = min(tm, _round_up(M, 8))
    m_pad = _round_up(M, tm_eff)
    if m_pad != M:
        x = jnp.pad(x, ((0, m_pad - M), (0, 0)))
    nm = m_pad // tm_eff

    out = pl.pallas_call(
        functools.partial(_mlp2_kernel, act1=act1, act2=act2),
        out_shape=jax.ShapeDtypeStruct((m_pad, N), x.dtype),
        grid_spec=pltpu.PrefetchScalarGridSpec(
            num_scalar_prefetch=0,
            grid=(nm,),
            in_specs=[
                pl.BlockSpec((tm_eff, K), lambda i: (i, 0)),
                pl.BlockSpec((K, H1), lambda i: (0, 0)),
                pl.BlockSpec((1, H1), lambda i: (0, 0)),
                pl.BlockSpec((H1, N), lambda i: (0, 0)),
                pl.BlockSpec((1, N), lambda i: (0, 0)),
            ],
            out_specs=pl.BlockSpec((tm_eff, N), lambda i: (i, 0)),
        ),
        compiler_params=pltpu.CompilerParams(
            dimension_semantics=("parallel",)),
    )(x, w1, b1r, w2, b2r)
    return out[:M]


# ----------------------------------------------------------------------------
# Fused multi-head scaled-dot-product attention
# ----------------------------------------------------------------------------
def _attn_kernel(q_ref, k_ref, v_ref, o_ref, *, scale):
    q = q_ref[...].astype(jnp.float32)
    k = k_ref[...].astype(jnp.float32)
    v = v_ref[...].astype(jnp.float32)
    s = jnp.einsum("bld,bmd->blm", q, k,
                   preferred_element_type=jnp.float32) * scale
    s = s - jnp.max(s, axis=-1, keepdims=True)
    p = jnp.exp(s)
    p = p / jnp.sum(p, axis=-1, keepdims=True)
    o = jnp.einsum("blm,bmd->bld", p, v, preferred_element_type=jnp.float32)
    o_ref[...] = o.astype(o_ref.dtype)


def pallas_sdpa(q, k, v, scale):
    B, L, hd = q.shape
    spec = pl.BlockSpec((B, L, hd), lambda i: (0, 0, 0))
    return pl.pallas_call(
        functools.partial(_attn_kernel, scale=scale),
        out_shape=jax.ShapeDtypeStruct((B, L, hd), q.dtype),
        grid_spec=pltpu.PrefetchScalarGridSpec(
            num_scalar_prefetch=0,
            grid=(1,),
            in_specs=[spec, spec, spec],
            out_specs=spec,
        ),
        compiler_params=pltpu.CompilerParams(
            dimension_semantics=("arbitrary",)),
    )(q, k, v)


# ----------------------------------------------------------------------------
# Fused external-memory read + residual:  out = base + softmax(mo @ M^T) @ M
# ----------------------------------------------------------------------------
def _memory_read_kernel(mo_ref, base_ref, mem_ref, o_ref):
    mo = mo_ref[...].astype(jnp.float32)
    mem = mem_ref[...].astype(jnp.float32)
    s = jnp.einsum("mh,rh->mr", mo, mem, preferred_element_type=jnp.float32)
    s = s - jnp.max(s, axis=-1, keepdims=True)
    p = jnp.exp(s)
    p = p / jnp.sum(p, axis=-1, keepdims=True)
    read = jnp.dot(p, mem, preferred_element_type=jnp.float32)
    o_ref[...] = (base_ref[...].astype(jnp.float32) + read).astype(o_ref.dtype)


def pallas_memory_read_residual(mem_out, base, memory, *, tm=256):
    M, H = mem_out.shape
    R = memory.shape[0]
    tm_eff = min(tm, _round_up(M, 8))
    m_pad = _round_up(M, tm_eff)
    if m_pad != M:
        mem_out = jnp.pad(mem_out, ((0, m_pad - M), (0, 0)))
        base = jnp.pad(base, ((0, m_pad - M), (0, 0)))
    out = pl.pallas_call(
        _memory_read_kernel,
        out_shape=jax.ShapeDtypeStruct((m_pad, H), base.dtype),
        grid_spec=pltpu.PrefetchScalarGridSpec(
            num_scalar_prefetch=0,
            grid=(m_pad // tm_eff,),
            in_specs=[
                pl.BlockSpec((tm_eff, H), lambda i: (i, 0)),
                pl.BlockSpec((tm_eff, H), lambda i: (i, 0)),
                pl.BlockSpec((R, H), lambda i: (0, 0)),
            ],
            out_specs=pl.BlockSpec((tm_eff, H), lambda i: (i, 0)),
        ),
        compiler_params=pltpu.CompilerParams(
            dimension_semantics=("parallel",)),
    )(mem_out, base, memory)
    return out[:M]


# ----------------------------------------------------------------------------
# 2-layer LSTM over the (sequential) time grid; h/c carried in VMEM scratch
# ----------------------------------------------------------------------------
def _lstm2_kernel(x_ref, wx1_ref, wh1_ref, b1_ref, wx2_ref, wh2_ref, b2_ref,
                  o_ref, h1_ref, c1_ref, h2_ref, c2_ref):
    t = pl.program_id(0)

    @pl.when(t == 0)
    def _():
        h1_ref[...] = jnp.zeros_like(h1_ref)
        c1_ref[...] = jnp.zeros_like(c1_ref)
        h2_ref[...] = jnp.zeros_like(h2_ref)
        c2_ref[...] = jnp.zeros_like(c2_ref)

    def cell(inp, h, c, wx, wh, b):
        g = (jnp.dot(inp, wx, preferred_element_type=jnp.float32)
             + jnp.dot(h, wh, preferred_element_type=jnp.float32)
             + b.astype(jnp.float32))
        i, f, gg, o = jnp.split(g, 4, axis=-1)  # PyTorch gate order: i, f, g, o
        c_new = jax.nn.sigmoid(f) * c + jax.nn.sigmoid(i) * jnp.tanh(gg)
        h_new = jax.nn.sigmoid(o) * jnp.tanh(c_new)
        return h_new, c_new

    x_t = x_ref[0].astype(jnp.float32)
    h1, c1 = cell(x_t, h1_ref[...], c1_ref[...],
                  wx1_ref[...].astype(jnp.float32),
                  wh1_ref[...].astype(jnp.float32), b1_ref[...])
    h1_ref[...] = h1
    c1_ref[...] = c1
    h2, c2 = cell(h1, h2_ref[...], c2_ref[...],
                  wx2_ref[...].astype(jnp.float32),
                  wh2_ref[...].astype(jnp.float32), b2_ref[...])
    h2_ref[...] = h2
    c2_ref[...] = c2
    o_ref[0] = h2.astype(o_ref.dtype)


def pallas_lstm2(x, wx1, wh1, b1, wx2, wh2, b2):
    L, N, D = x.shape
    H = wh1.shape[0]

    def wspec(shape):
        return pl.BlockSpec(shape, lambda t: (0, 0))

    return pl.pallas_call(
        _lstm2_kernel,
        out_shape=jax.ShapeDtypeStruct((L, N, H), x.dtype),
        grid_spec=pltpu.PrefetchScalarGridSpec(
            num_scalar_prefetch=0,
            grid=(L,),
            in_specs=[
                pl.BlockSpec((1, N, D), lambda t: (t, 0, 0)),
                wspec((D, 4 * H)), wspec((H, 4 * H)), wspec((1, 4 * H)),
                wspec((H, 4 * H)), wspec((H, 4 * H)), wspec((1, 4 * H)),
            ],
            out_specs=pl.BlockSpec((1, N, H), lambda t: (t, 0, 0)),
            scratch_shapes=[pltpu.VMEM((N, H), jnp.float32) for _ in range(4)],
        ),
        compiler_params=pltpu.CompilerParams(
            dimension_semantics=("arbitrary",)),  # sequential: carries h/c state
    )(x, wx1, wh1, b1, wx2, wh2, b2)


# ----------------------------------------------------------------------------
# Full forward pass of AdvancedMetaLearningFunction
# ----------------------------------------------------------------------------
def advanced_meta_forward(params, x, task_id, eps):
    B, S, D = x.shape
    H = params["task_embedding"].shape[1]
    num_tasks = params["dom_w2"].shape[1]
    M = B * S

    # task embedding + hyper-network (fused 2-layer MLP) -> dynamic Linear
    task_emb = params["task_embedding"][task_id]                       # (1, H)
    hyper_out = pallas_mlp2(task_emb, params["hyper_w1"], params["hyper_b1"],
                            params["hyper_w2"], params["hyper_b2"],
                            act1="relu")
    w_flat, b_dyn = hyper_out[:, :D * H], hyper_out[:, D * H:]
    w_dyn = w_flat.reshape(H, D)                    # torch .view(hidden, input)
    x_lin = pallas_linear(x.reshape(M, D), w_dyn.T, b_dyn.reshape(H))
    x_lin = x_lin.reshape(B, S, H)

    # multi-head self-attention (torch batch_first=False: attends over dim 0)
    E, hd = H, H // N_HEADS
    L, Nb = B, S
    qkv = pallas_linear(x_lin.reshape(L * Nb, E),
                        params["attn_in_w"], params["attn_in_b"])
    q, k, v = jnp.split(qkv, 3, axis=-1)

    def to_heads(t):
        return (t.reshape(L, Nb, N_HEADS, hd)
                 .transpose(1, 2, 0, 3)
                 .reshape(Nb * N_HEADS, L, hd))

    o_h = pallas_sdpa(to_heads(q), to_heads(k), to_heads(v),
                      scale=1.0 / math.sqrt(hd))
    o_h = (o_h.reshape(Nb, N_HEADS, L, hd)
              .transpose(2, 0, 1, 3)
              .reshape(L * Nb, E))
    # output projection fused with the residual add: x + attn_out
    x_res = pallas_linear(o_h, params["attn_out_w"], params["attn_out_b"],
                          residual=x_lin.reshape(M, H)).reshape(B, S, H)

    # variational information bottleneck (fused 2-layer MLP)
    xf = x_res.reshape(M, H)
    vib = pallas_mlp2(xf, params["vib_w1"], params["vib_b1"],
                      params["vib_w2"], params["vib_b2"], act1="relu")
    mu, log_var = jnp.split(vib, 2, axis=-1)
    z = mu + eps.reshape(M, H) * jnp.exp(0.5 * log_var)
    kl_div = jnp.mean(-0.5 * jnp.sum(1.0 + log_var - mu ** 2 - jnp.exp(log_var),
                                     axis=-1))

    # domain classifier (gradient reversal == identity in the forward pass)
    domain_pred = pallas_mlp2(z, params["dom_w1"], params["dom_b1"],
                              params["dom_w2"], params["dom_b2"], act1="relu")
    domain_pred = domain_pred.reshape(B, S, num_tasks)

    # 2-layer LSTM memory controller (torch batch_first=False: time axis = dim 0)
    mem_out = pallas_lstm2(x_res, params["lstm_wx1"], params["lstm_wh1"],
                           params["lstm_b1"], params["lstm_wx2"],
                           params["lstm_wh2"], params["lstm_b2"])

    # external-memory read + residual
    x_out = pallas_memory_read_residual(mem_out.reshape(M, H), xf,
                                        params["memory"]).reshape(B, S, H)

    # uncertainty head (fused 2-layer MLP)
    u = pallas_mlp2(x_out.reshape(M, H), params["unc_w1"], params["unc_b1"],
                    params["unc_w2"], params["unc_b2"], act1="relu")
    _u_mu, u_log_var = jnp.split(u, 2, axis=-1)
    uncertainty = jnp.exp(u_log_var).reshape(B, S, 1)

    return x_out, {"kl_div": kl_div, "domain_pred": domain_pred,
                   "uncertainty": uncertainty, "task_emb": task_emb}


# ----------------------------------------------------------------------------
# Pure-JAX reference (same math, no Pallas) for the self-check
# ----------------------------------------------------------------------------
_HI = jax.lax.Precision.HIGHEST


def _reference_forward(params, x, task_id, eps):
    B, S, D = x.shape
    H = params["task_embedding"].shape[1]
    M = B * S
    dot = functools.partial(jnp.dot, precision=_HI)

    task_emb = params["task_embedding"][task_id]
    h = jax.nn.relu(dot(task_emb, params["hyper_w1"]) + params["hyper_b1"])
    hyper_out = dot(h, params["hyper_w2"]) + params["hyper_b2"]
    w_flat, b_dyn = hyper_out[:, :D * H], hyper_out[:, D * H:]
    w_dyn = w_flat.reshape(H, D)
    x_lin = (dot(x.reshape(M, D), w_dyn.T) + b_dyn.reshape(H)).reshape(B, S, H)

    E, hd = H, H // N_HEADS
    L, Nb = B, S
    qkv = dot(x_lin.reshape(L * Nb, E), params["attn_in_w"]) + params["attn_in_b"]
    q, k, v = jnp.split(qkv, 3, axis=-1)

    def heads(t):
        return (t.reshape(L, Nb, N_HEADS, hd).transpose(1, 2, 0, 3)
                 .reshape(Nb * N_HEADS, L, hd))

    q, k, v = heads(q), heads(k), heads(v)
    s = jnp.einsum("bld,bmd->blm", q, k, precision=_HI) / math.sqrt(hd)
    p = jax.nn.softmax(s, axis=-1)
    o = jnp.einsum("blm,bmd->bld", p, v, precision=_HI)
    o = o.reshape(Nb, N_HEADS, L, hd).transpose(2, 0, 1, 3).reshape(L * Nb, E)
    attn_out = dot(o, params["attn_out_w"]) + params["attn_out_b"]
    x_res = x_lin + attn_out.reshape(B, S, H)

    xf = x_res.reshape(M, H)
    v1 = jax.nn.relu(dot(xf, params["vib_w1"]) + params["vib_b1"])
    vib = dot(v1, params["vib_w2"]) + params["vib_b2"]
    mu, log_var = jnp.split(vib, 2, axis=-1)
    z = mu + eps.reshape(M, H) * jnp.exp(0.5 * log_var)
    kl_div = jnp.mean(-0.5 * jnp.sum(1.0 + log_var - mu ** 2 - jnp.exp(log_var),
                                     axis=-1))

    d1 = jax.nn.relu(dot(z, params["dom_w1"]) + params["dom_b1"])
    domain_pred = (dot(d1, params["dom_w2"]) + params["dom_b2"]).reshape(B, S, -1)

    def cell(inp, hst, cst, wx, wh, b):
        g = dot(inp, wx) + dot(hst, wh) + b
        i, f, gg, o_ = jnp.split(g, 4, axis=-1)
        c_new = jax.nn.sigmoid(f) * cst + jax.nn.sigmoid(i) * jnp.tanh(gg)
        h_new = jax.nn.sigmoid(o_) * jnp.tanh(c_new)
        return h_new, c_new

    h1 = c1 = h2 = c2 = jnp.zeros((S, H), jnp.float32)
    outs = []
    for t in range(B):
        h1, c1 = cell(x_res[t], h1, c1, params["lstm_wx1"], params["lstm_wh1"],
                      params["lstm_b1"])
        h2, c2 = cell(h1, h2, c2, params["lstm_wx2"], params["lstm_wh2"],
                      params["lstm_b2"])
        outs.append(h2)
    mem_out = jnp.stack(outs, axis=0)

    scores = dot(mem_out.reshape(M, H), params["memory"].T)
    attn = jax.nn.softmax(scores, axis=-1)
    read = dot(attn, params["memory"])
    x_out = (xf + read).reshape(B, S, H)

    u1 = jax.nn.relu(dot(x_out.reshape(M, H), params["unc_w1"]) + params["unc_b1"])
    u = dot(u1, params["unc_w2"]) + params["unc_b2"]
    _umu, ulogvar = jnp.split(u, 2, axis=-1)
    uncertainty = jnp.exp(ulogvar).reshape(B, S, 1)

    return x_out, {"kl_div": kl_div, "domain_pred": domain_pred,
                   "uncertainty": uncertainty, "task_emb": task_emb}


if __name__ == "__main__":
    B, S = 2, 8          # batch, sequence
    D = 32               # input_dim (divisible by 8 heads)
    H = 32               # hidden_dim (module requires hidden_dim == input_dim)
    NUM_TASKS = 4

    key = jax.random.PRNGKey(0)
    keys = jax.random.split(key, 32)
    ki = iter(keys)

    def uni(k, shape, fan_in):
        lim = 1.0 / math.sqrt(fan_in)
        return jax.random.uniform(k, shape, jnp.float32, -lim, lim)

    params = {
        "task_embedding": jax.random.normal(next(ki), (NUM_TASKS, H), jnp.float32),
        "hyper_w1": uni(next(ki), (H, 2 * H), H),
        "hyper_b1": uni(next(ki), (2 * H,), H),
        "hyper_w2": uni(next(ki), (2 * H, D * H + H), 2 * H),
        "hyper_b2": uni(next(ki), (D * H + H,), 2 * H),
        "attn_in_w": uni(next(ki), (D, 3 * D), D),
        "attn_in_b": uni(next(ki), (3 * D,), D),
        "attn_out_w": uni(next(ki), (D, D), D),
        "attn_out_b": uni(next(ki), (D,), D),
        "vib_w1": uni(next(ki), (D, H), D),
        "vib_b1": uni(next(ki), (H,), D),
        "vib_w2": uni(next(ki), (H, 2 * H), H),
        "vib_b2": uni(next(ki), (2 * H,), H),
        "dom_w1": uni(next(ki), (H, H // 2), H),
        "dom_b1": uni(next(ki), (H // 2,), H),
        "dom_w2": uni(next(ki), (H // 2, NUM_TASKS), H // 2),
        "dom_b2": uni(next(ki), (NUM_TASKS,), H // 2),
        "memory": jax.random.normal(next(ki), (100, H), jnp.float32),
        "lstm_wx1": uni(next(ki), (D, 4 * H), H),
        "lstm_wh1": uni(next(ki), (H, 4 * H), H),
        "lstm_b1": uni(next(ki), (1, 4 * H), H),
        "lstm_wx2": uni(next(ki), (H, 4 * H), H),
        "lstm_wh2": uni(next(ki), (H, 4 * H), H),
        "lstm_b2": uni(next(ki), (1, 4 * H), H),
        "unc_w1": uni(next(ki), (H, H // 2), H),
        "unc_b1": uni(next(ki), (H // 2,), H),
        "unc_w2": uni(next(ki), (H // 2, 2), H // 2),
        "unc_b2": uni(next(ki), (2,), H // 2),
    }

    x = jax.random.normal(next(ki), (B, S, D), jnp.float32)
    eps = jax.random.normal(next(ki), (B, S, H), jnp.float32)
    task_id = jnp.array([1], dtype=jnp.int32)

    out, aux = advanced_meta_forward(params, x, task_id, eps)
    out = jax.block_until_ready(out)

    ref_out, ref_aux = _reference_forward(params, x, task_id, eps)

    assert out.shape == (B, S, H)
    assert aux["domain_pred"].shape == (B, S, NUM_TASKS)
    assert aux["uncertainty"].shape == (B, S, 1)
    assert aux["task_emb"].shape == (1, H)

    def close(a, b, name):
        assert jnp.allclose(a, b, atol=1e-2, rtol=1e-2), f"mismatch in {name}"

    close(out, ref_out, "x")
    close(aux["kl_div"], ref_aux["kl_div"], "kl_div")
    close(aux["domain_pred"], ref_aux["domain_pred"], "domain_pred")
    close(aux["uncertainty"], ref_aux["uncertainty"], "uncertainty")

    print("KERNEL_OK")
</pallas_src>

<mosaic_0001>
module attributes {stable_mosaic.version = 11 : i64} {
  func.func @_mlp2_kernel(%arg0: i32, %arg1: memref<8x32xf32, #tpu.memory_space<vmem>>, %arg2: memref<32x64xf32, #tpu.memory_space<vmem>>, %arg3: memref<1x64xf32, #tpu.memory_space<vmem>>, %arg4: memref<64x1056xf32, #tpu.memory_space<vmem>>, %arg5: memref<1x1056xf32, #tpu.memory_space<vmem>>, %arg6: memref<8x1056xf32, #tpu.memory_space<vmem>>) attributes {dimension_semantics = [#tpu.dimension_semantics<parallel>], iteration_bounds = array<i64: 1>, scalar_prefetch = 0 : i64, scratch_operands = 0 : i64, tpu.core_type = #tpu.core_type<tc>, window_params = [{transform_indices = @transform_0, window_bounds = array<i64: 8, 32>}, {pipeline_mode = #tpu.pipeline_mode<synchronous>, transform_indices = @transform_1, window_bounds = array<i64: 32, 64>}, {pipeline_mode = #tpu.pipeline_mode<synchronous>, transform_indices = @transform_2, window_bounds = array<i64: 1, 64>}, {pipeline_mode = #tpu.pipeline_mode<synchronous>, transform_indices = @transform_3, window_bounds = array<i64: 64, 1056>}, {pipeline_mode = #tpu.pipeline_mode<synchronous>, transform_indices = @transform_4, window_bounds = array<i64: 1, 1056>}, {transform_indices = @transform_5, window_bounds = array<i64: 8, 1056>}]} {
    %c0 = arith.constant 0 : index
    %c0_0 = arith.constant 0 : index
    %0 = vector.load %arg1[%c0, %c0_0] : memref<8x32xf32, #tpu.memory_space<vmem>>, vector<8x32xf32>
    %c0_1 = arith.constant 0 : index
    %c0_2 = arith.constant 0 : index
    %1 = vector.load %arg2[%c0_1, %c0_2] : memref<32x64xf32, #tpu.memory_space<vmem>>, vector<32x64xf32>
    %cst = arith.constant dense<0.000000e+00> : vector<8x64xf32>
    %2 = tpu.matmul %0, %1, %cst {dimension_numbers = #tpu.dot_dimension_numbers<[1], [0], [0], [1], [0, 0, 1, 1], [], []>} : vector<8x32xf32>, vector<32x64xf32>, vector<8x64xf32> -> vector<8x64xf32>
    %c0_3 = arith.constant 0 : index
    %c0_4 = arith.constant 0 : index
    %3 = vector.load %arg3[%c0_3, %c0_4] : memref<1x64xf32, #tpu.memory_space<vmem>>, vector<1x64xf32>
    %4 = vector.broadcast %3 : vector<1x64xf32> to vector<8x64xf32>
    %5 = arith.addf %2, %4 : vector<8x64xf32>
    %cst_5 = arith.constant 0.000000e+00 : f32
    %6 = vector.broadcast %cst_5 : f32 to vector<8x64xf32>
    %7 = arith.maximumf %5, %6 : vector<8x64xf32>
    %c0_6 = arith.constant 0 : index
    %c0_7 = arith.constant 0 : index
    %8 = vector.load %arg4[%c0_6, %c0_7] : memref<64x1056xf32, #tpu.memory_space<vmem>>, vector<64x1056xf32>
    %cst_8 = arith.constant dense<0.000000e+00> : vector<8x1056xf32>
    %9 = tpu.matmul %7, %8, %cst_8 {dimension_numbers = #tpu.dot_dimension_numbers<[1], [0], [0], [1], [0, 0, 1, 1], [], []>} : vector<8x64xf32>, vector<64x1056xf32>, vector<8x1056xf32> -> vector<8x1056xf32>
    %c0_9 = arith.constant 0 : index
    %c0_10 = arith.constant 0 : index
    %10 = vector.load %arg5[%c0_9, %c0_10] : memref<1x1056xf32, #tpu.memory_space<vmem>>, vector<1x1056xf32>
    %11 = vector.broadcast %10 : vector<1x1056xf32> to vector<8x1056xf32>
    %12 = arith.addf %9, %11 : vector<8x1056xf32>
    %c0_11 = arith.constant 0 : index
    %c0_12 = arith.constant 0 : index
    %13 = vector.load %arg6[%c0_11, %c0_12] : memref<8x1056xf32, #tpu.memory_space<vmem>>, vector<8x1056xf32>
    tpu.vector_store %arg6[%c0_11, %c0_12], %12 {strides = array<i32>} : memref<8x1056xf32, #tpu.memory_space<vmem>>, vector<8x1056xf32>,
    return
  }
  func.func @transform_0(%arg0: i32) -> (i32, i32) {
    %c0_i32 = arith.constant 0 : i32
    %c0_i32_0 = arith.constant 0 : i32
    return %arg0, %c0_i32 : i32, i32
  }
  func.func @transform_1(%arg0: i32) -> (i32, i32) {
    %c0_i32 = arith.constant 0 : i32
    %c0_i32_0 = arith.constant 0 : i32
    %c0_i32_1 = arith.constant 0 : i32
    return %c0_i32, %c0_i32_0 : i32, i32
  }
  func.func @transform_2(%arg0: i32) -> (i32, i32) {
    %c0_i32 = arith.constant 0 : i32
    %c0_i32_0 = arith.constant 0 : i32
    %c0_i32_1 = arith.constant 0 : i32
    return %c0_i32, %c0_i32_0 : i32, i32
  }
  func.func @transform_3(%arg0: i32) -> (i32, i32) {
    %c0_i32 = arith.constant 0 : i32
    %c0_i32_0 = arith.constant 0 : i32
    %c0_i32_1 = arith.constant 0 : i32
    return %c0_i32, %c0_i32_0 : i32, i32
  }
  func.func @transform_4(%arg0: i32) -> (i32, i32) {
    %c0_i32 = arith.constant 0 : i32
    %c0_i32_0 = arith.constant 0 : i32
    %c0_i32_1 = arith.constant 0 : i32
    return %c0_i32, %c0_i32_0 : i32, i32
  }
  func.func @transform_5(%arg0: i32) -> (i32, i32) {
    %c0_i32 = arith.constant 0 : i32
    %c0_i32_0 = arith.constant 0 : i32
    return %arg0, %c0_i32 : i32, i32
  }
}

</mosaic_0001>

<bundles_post_ra>
// kernel: tpu_custom_call.1
= control target key start
LH: loop header
LB: loop body
LE: loop exit
PB: predicated region body
PF: predicated region fallthrough
CT: control target
= control target key end

     0   :  { %10 = vsyncpa [#allocation3], 0  ;;  %s1016_s0 = inlined_call_operand.hbm [shape: f32[8,32], index: 0, kind: input, shape index: {}]   ;;  %s1017_s1 = inlined_call_operand.hbm [shape: f32[32,64], index: 1, kind: input, shape index: {}]   ;;  %s1018_s2 = inlined_call_operand.vmem [shape: f32[1,64], index: 2, kind: input, shape index: {}]   ;;  %s1019_s3 = inlined_call_operand.hbm [shape: f32[64,1056], index: 3, kind: input, shape index: {}]   ;;  %s1020_s4 = inlined_call_operand.vmem [shape: f32[1,1056], index: 4, kind: input, shape index: {}]   ;;  %s1021_s5 = inlined_call_operand.hbm [shape: f32[8,1056], index: 5, kind: output, shape index: {}]  }
   0x1   :  { %11 = vsyncpa [#allocation6], 0 }
   0x2   :  { %12 = vsyncpa [#allocation4], 0  ;;  %s890_s18 = smov [#allocation5]   ;;  %s796_s22 = scalar_lea.hbm %s1017_s1, 512 }
   0x3   :  { %s28_s19 = sshll.u32 %s890_s18, 4  ;;  %p797_p0 = scmp.ne.s32.totalorder %s1017_s1, %s796_s22  ;;  %s29_s19 = int_to_ptr.vmem [resolvable:$true] %s28_s19 }
   0x4   :  { %p800_p1 = scmp.lt.u32.totalorder %s796_s22, %s1017_s1 }
   0x6   :  { %p802_p2 = pnand %p800_p1, %p797_p0 }
   0x8   :  { %805 = shalt.err (!%p802_p2)
}
   0x9   :  { %s806_s27 = scalar_lea.vmem %s29_s19, 512  ;;  %p811_p4 = scmp.lt.s32.totalorder %s29_s19, %s29_s19 }
   0xa   :  { %p807_p3 = scmp.ne.s32.totalorder %s29_s19, %s806_s27  ;;  %p812_p5 = scmp.lt.s32.totalorder %s806_s27, %s806_s27 }
   0xc   :  { %p813_p6 = por %p812_p5, %p811_p4 }
   0xe   :  { %p814_p7 = pnand %p813_p6, %p807_p3 }
  0x10   :  { %817 = shalt.err (!%p814_p7)
}
  0x11   :  { %s891_s28 = smov 128   ;;  %s892_s29 = smov 8  }
  0x12   :  { %34 = dma.hbm_to_vmem [thread:$0]  %s1017_s1, 512, %s29_s19, [#allocation6], %s891_s28, %s891_s28, %s892_s29  }
  0x13   :  { %s893_s7 = smov [#allocation2]   ;;  %s894_s9 = smov [#allocation7]  }
  0x14   :  { %s19_s8 = sshll.u32 %s893_s7, 4  ;;  %s42_s10 = sshll.u32 %s894_s9, 4  ;;  %s20_s8 = int_to_ptr.vmem [resolvable:$true] %s19_s8  ;;  %s43_s10 = int_to_ptr.vmem [resolvable:$true] %s42_s10 }
  0x15   :  { %s818_s13 = scalar_lea.hbm %s1016_s0, 128 }
  0x16   :  { %p819_p8 = scmp.ne.s32.totalorder %s1016_s0, %s818_s13  ;;  %p822_p9 = scmp.lt.u32.totalorder %s818_s13, %s1016_s0 }
  0x18   :  { %p824_p10 = pnand %p822_p9, %p819_p8 }
  0x1a   :  { %827 = shalt.err (!%p824_p10)
}
  0x1b   :  { %s828_s1 = scalar_lea.vmem %s20_s8, 128  ;;  %p833_p12 = scmp.lt.s32.totalorder %s20_s8, %s20_s8 }
  0x1c   :  { %p829_p11 = scmp.ne.s32.totalorder %s20_s8, %s828_s1  ;;  %p834_p13 = scmp.lt.s32.totalorder %s828_s1, %s828_s1 }
  0x1e   :  { %p835_p0 = por %p834_p13, %p833_p12 }
  0x20   :  { %p836_p1 = pnand %p835_p0, %p829_p11 }
  0x22   :  { %839 = shalt.err (!%p836_p1)
}
  0x23   :  { %22 = dma.hbm_to_vmem [thread:$0]  %s1016_s0, 128, %s20_s8, [#allocation3]  }
  0x24   :  { %s840_s22 = scalar_lea.hbm %s1019_s3, 9216 }
  0x25   :  { %p841_p2 = scmp.ne.s32.totalorder %s1019_s3, %s840_s22  ;;  %p844_p3 = scmp.lt.u32.totalorder %s840_s22, %s1019_s3 }
  0x27   :  { %p846_p4 = pnand %p844_p3, %p841_p2 }
  0x29   :  { %849 = shalt.err (!%p846_p4)
}
  0x2a   :  { %s850_s27 = scalar_lea.vmem %s43_s10, 9216  ;;  %p855_p6 = scmp.lt.s32.totalorder %s43_s10, %s43_s10 }
  0x2b   :  { %p851_p5 = scmp.ne.s32.totalorder %s43_s10, %s850_s27  ;;  %p856_p7 = scmp.lt.s32.totalorder %s850_s27, %s850_s27 }
  0x2d   :  { %p857_p8 = por %p856_p7, %p855_p6 }
  0x2f   :  { %p858_p9 = pnand %p857_p8, %p851_p5 }
  0x31   :  { %861 = shalt.err (!%p858_p9)
}
  0x32   :  { %s895_s0 = smov 1152   ;;  %s896_s28 = smov 72  }
  0x33   :  { %48 = dma.hbm_to_vmem [thread:$0]  %s1019_s3, 9216, %s43_s10, [#allocation6], %s895_s0, %s895_s0, %s896_s28  }
  0x34   :  { %884 = dma.done.wait [#allocation3], 128  }
  0x35   :  { %885 = vsyncadd [#allocation3], 4294967168 }
  0x36   :  { %886 = dma.done.wait [#allocation6], 9728  }
  0x37   :  { %887 = vsyncadd [#allocation6], 4294957568  ;;  %v897_v0 = vmov 0.0|0.0   ;;  %vm898_vm0 = vmmov 0   ;;  %v899_v1 = vmov 0.0   ;;  %v61_v2 = vld [vmem:[#allocation5] sm:$0xff] }
  0x38   :  { %703 = vmatprep.subr.bf16.mxu0 %v897_v0  ;;  %681 = vmatprep.mubr.msk.f32.mxu0 %vm898_vm0, %v899_v1  ;;  %v62_v3 = vld [vmem:[#allocation5 + $0x8] sm:$0xff]  ;;  %v63_v4 = vld [vmem:[#allocation5 + $0x10] sm:$0xff]  ;;  %v64_v6 = vld [vmem:[#allocation5 + $0x18] sm:$0xff]  ;;  %vm72_vm1 = vcmask 261120   ;;  %vm268_vm2 = vcmask 523264   ;;  %s900_s10 = smov [#allocation8]  }
  0x39   :  { %336 = vmatprep.mubr.f32.mxu1 %v899_v1  ;;  %v704_v5 = vpack.c.bf16 %v62_v3, %v61_v2  ;;  %v148_v7 = vld [vmem:[#allocation7 + $0x8] sm:$0xff]  ;;  %v157_v8 = vld [vmem:[#allocation7 + $0x50] sm:$0xff]  ;;  %v150_v9 = vld [vmem:[#allocation7 + $0x18] sm:$0xff]  ;;  %v707_v11 = vpack.c.bf16 %v64_v6, %v63_v4  ;;  %s641_s11 = sshll.u32 %s900_s10, 4  ;;  %s642_s11 = int_to_ptr.vmem [resolvable:$true] %s641_s11 }
  0x3a   :  { %v159_v10 = vld [vmem:[#allocation7 + $0x60] sm:$0xff]  ;;  %v709_v12 = vpack.c.bf16 %v157_v8, %v148_v7  ;;  %v156_v14 = vld [vmem:[#allocation7 + $0x48] sm:$0xff]  ;;  %v149_v15 = vld [vmem:[#allocation7 + $0x10] sm:$0xff]  ;;  %s862_s12 = scalar_lea.vmem %s642_s11, 1152  ;;  %p867_p11 = scmp.lt.s32.totalorder %s642_s11, %s642_s11 }
  0x3b   :  { %705 = vmatpush3.bf16.msra.mxu0 %v704_v5  ;;  %v147_v13 = vld [vmem:[#allocation7] sm:$0xff]  ;;  %v725_v16 = vpack.c.bf16 %v159_v10, %v150_v9  ;;  %v158_v18 = vld [vmem:[#allocation7 + $0x58] sm:$0xff]  ;;  %v168_v22 = vld [vmem:[#allocation7 + $0xa8] sm:$0xff]  ;;  %p863_p10 = scmp.ne.s32.totalorder %s642_s11, %s862_s12  ;;  %p868_p12 = scmp.lt.s32.totalorder %s862_s12, %s862_s12 }
  0x3c   :  { %706 = vmatprep.subr.bf16.mxu0 %v897_v0  ;;  %v711_v17 = vpack.c.bf16 %v156_v14, %v147_v13  ;;  %v166_v19 = vld [vmem:[#allocation7 + $0x98] sm:$0xff]  ;;  %v175_v20 = vld [vmem:[#allocation7 + $0xe0] sm:$0xff]  ;;  %710 = vmatprep.subr.bf16.mxu1 %v709_v12  ;;  %v177_v23 = vld [vmem:[#allocation7 + $0xf0] sm:$0xff]  ;;  %v727_v27 = vpack.c.bf16 %v158_v18, %v149_v15 }
  0x3d   :  { %v713_v21 = vpack.c.bf16 %v175_v20, %v166_v19  ;;  %v165_v24 = vld [vmem:[#allocation7 + $0x90] sm:$0xff]  ;;  %v60_v25 = vld [vmem:[#allocation2] sm:$0xff]  ;;  %v167_v29 = vld [vmem:[#allocation7 + $0xa0] sm:$0xff]  ;;  %v729_v32 = vpack.c.bf16 %v177_v23, %v168_v22  ;;  %p869_p13 = por %p868_p12, %p867_p11 }
  0x3e   :  { %712 = vmatpush1.bf16.msra.mxu1 %v711_v17  ;;  %v174_v26 = vld [vmem:[#allocation7 + $0xd8] sm:$0xff]  ;;  %v184_v30 = vld [vmem:[#allocation7 + $0x128] sm:$0xff]  ;;  %v193_v31 = vld [vmem:[#allocation7 + $0x170] sm:$0xff] }
  0x3f   :  { %708 = vmatpush3.bf16.msra.mxu0 %v707_v11  ;;  %714 = vmatprep.subr.bf16.mxu1 %v713_v21  ;;  %v715_v28 = vpack.c.bf16 %v174_v26, %v165_v24  ;;  %v176_v33 = vld [vmem:[#allocation7 + $0xe8] sm:$0xff]  ;;  %v717_v34 = vpack.c.bf16 %v193_v31, %v184_v30  ;;  %v183_v35 = vld [vmem:[#allocation7 + $0x120] sm:$0xff]  ;;  %v186_v37 = vld [vmem:[#allocation7 + $0x138] sm:$0xff]  ;;  %p870_p0 = pnand %p869_p13, %p863_p10 }
  0x40   :  { %726 = vmatprep.subr.bf16.mxu0 %v725_v16  ;;  %v192_v36 = vld [vmem:[#allocation7 + $0x168] sm:$0xff]  ;;  %v195_v38 = vld [vmem:[#allocation7 + $0x180] sm:$0xff]  ;;  %v731_v40 = vpack.c.bf16 %v176_v33, %v167_v29  ;;  %v185_v42 = vld [vmem:[#allocation7 + $0x130] sm:$0xff] }
  0x41   :  { %v719_v39 = vpack.c.bf16 %v192_v36, %v183_v35  ;;  %v733_v41 = vpack.c.bf16 %v195_v38, %v186_v37  ;;  %v194_v43 = vld [vmem:[#allocation7 + $0x178] sm:$0xff]  ;;  %v211_v46 = vld [vmem:[#allocation7 + $0x200] sm:$0xff]  ;;  %v204_v47 = vld [vmem:[#allocation7 + $0x1c8] sm:$0xff] }
  0x42   :  { %682 = vmatmul.mubr.msk.f32.vlgmr.msra.gmra.mrb[0].mxu0 %vm72_vm1, %v60_v25  ;;  %716 = vmatpush1.bf16.msra.mxu1 %v715_v28  ;;  %v735_v44 = vpack.c.bf16 %v194_v43, %v185_v42  ;;  %v202_v45 = vld [vmem:[#allocation7 + $0x1b8] sm:$0xff]  ;;  %v213_v49 = vld [vmem:[#allocation7 + $0x210] sm:$0xff]  ;;  %v203_v54 = vld [vmem:[#allocation7 + $0x1c0] sm:$0xff] }
  0x43   :  { %728 = vmatpush1.bf16.msra.mxu0 %v727_v27  ;;  %718 = vmatprep.subr.bf16.mxu1 %v717_v34  ;;  %v721_v48 = vpack.c.bf16 %v211_v46, %v202_v45  ;;  %v201_v50 = vld [vmem:[#allocation7 + $0x1b0] sm:$0xff]  ;;  %v210_v51 = vld [vmem:[#allocation7 + $0x1f8] sm:$0xff]  ;;  %v737_v52 = vpack.c.bf16 %v213_v49, %v204_v47  ;;  %v212_v55 = vld [vmem:[#allocation7 + $0x208] sm:$0xff] }
  0x44   :  { %730 = vmatprep.subr.bf16.mxu0 %v729_v32  ;;  %407 = vmatprep.mubr.f32.mxu0 %v899_v1  ;;  %v723_v53 = vpack.c.bf16 %v210_v51, %v201_v50  ;;  %v739_v56 = vpack.c.bf16 %v212_v55, %v203_v54  ;;  %v152_v57 = vld [vmem:[#allocation7 + $0x28] sm:$0xff]  ;;  %v161_v58 = vld [vmem:[#allocation7 + $0x70] sm:$0xff]  ;;  %v154_v59 = vld [vmem:[#allocation7 + $0x38] sm:$0xff] }
  0x45   :  { %v741_v60 = vpack.c.bf16 %v161_v58, %v152_v57  ;;  %v163_v61 = vld [vmem:[#allocation7 + $0x80] sm:$0xff]  ;;  %v651_v63 = vld [vmem:[%s1018_s2] ss:$0 sm:$0xff]  ;;  %v153_v4 = vld [vmem:[#allocation7 + $0x30] sm:$0xff] }
  0x46   :  { %720 = vmatpush1.bf16.msra.mxu1 %v719_v39  ;;  %v757_v62 = vpack.c.bf16 %v163_v61, %v154_v59  ;;  %v151_v2 = vld [vmem:[#allocation7 + $0x20] sm:$0xff]  ;;  %v160_v3 = vld [vmem:[#allocation7 + $0x68] sm:$0xff]  ;;  %v162_v5 = vld [vmem:[#allocation7 + $0x78] sm:$0xff] }
  0x47   :  { %732 = vmatpush1.bf16.msra.mxu0 %v731_v40  ;;  %722 = vmatprep.subr.bf16.mxu1 %v721_v48  ;;  %v170_v6 = vld [vmem:[#allocation7 + $0xb8] sm:$0xff]  ;;  %v179_v8 = vld [vmem:[#allocation7 + $0x100] sm:$0xff]  ;;  %v172_v9 = vld [vmem:[#allocation7 + $0xc8] sm:$0xff]  ;;  %v743_v13 = vpack.c.bf16 %v160_v3, %v151_v2  ;;  %v759_v14 = vpack.c.bf16 %v162_v5, %v153_v4 }
  0x48   :  { %734 = vmatprep.subr.bf16.mxu0 %v733_v41  ;;  %v181_v10 = vld [vmem:[#allocation7 + $0x110] sm:$0xff]  ;;  %v178_v16 = vld [vmem:[#allocation7 + $0xf8] sm:$0xff]  ;;  %v745_v18 = vpack.c.bf16 %v179_v8, %v170_v6  ;;  %v171_v20 = vld [vmem:[#allocation7 + $0xc0] sm:$0xff] }
  0x49   :  { %v169_v15 = vld [vmem:[#allocation7 + $0xb0] sm:$0xff]  ;;  %v761_v19 = vpack.c.bf16 %v181_v10, %v172_v9  ;;  %v180_v21 = vld [vmem:[#allocation7 + $0x108] sm:$0xff]  ;;  %v190_v24 = vld [vmem:[#allocation7 + $0x158] sm:$0xff] }
  0x4a   :  { %724 = vmatpush1.bf16.msra.mxu1 %v723_v53  ;;  %v188_v22 = vld [vmem:[#allocation7 + $0x148] sm:$0xff]  ;;  %v197_v23 = vld [vmem:[#allocation7 + $0x190] sm:$0xff]  ;;  %v199_v25 = vld [vmem:[#allocation7 + $0x1a0] sm:$0xff]  ;;  %v747_v26 = vpack.c.bf16 %v178_v16, %v169_v15  ;;  %v763_v27 = vpack.c.bf16 %v180_v21, %v171_v20 }
  0x4b   :  { %736 = vmatpush1.bf16.msra.mxu0 %v735_v44  ;;  %742 = vmatprep.subr.bf16.mxu1 %v741_v60  ;;  %v187_v28 = vld [vmem:[#allocation7 + $0x140] sm:$0xff]  ;;  %v196_v29 = vld [vmem:[#allocation7 + $0x188] sm:$0xff]  ;;  %v749_v30 = vpack.c.bf16 %v197_v23, %v188_v22  ;;  %v765_v31 = vpack.c.bf16 %v199_v25, %v190_v24  ;;  %v189_v32 = vld [vmem:[#allocation7 + $0x150] sm:$0xff]  ;;  %v223_v60 = vlaneseq }
  0x4c   :  { %738 = vmatprep.subr.bf16.mxu0 %v737_v52  ;;  %v198_v33 = vld [vmem:[#allocation7 + $0x198] sm:$0xff]  ;;  %v215_v35 = vld [vmem:[#allocation7 + $0x220] sm:$0xff]  ;;  %v208_v36 = vld [vmem:[#allocation7 + $0x1e8] sm:$0xff]  ;;  %v751_v38 = vpack.c.bf16 %v196_v29, %v187_v28 }
  0x4d   :  { %v206_v34 = vld [vmem:[#allocation7 + $0x1d8] sm:$0xff]  ;;  %v217_v37 = vld [vmem:[#allocation7 + $0x230] sm:$0xff]  ;;  %v767_v39 = vpack.c.bf16 %v198_v33, %v189_v32  ;;  %v207_v44 = vld [vmem:[#allocation7 + $0x1e0] sm:$0xff] }
  0x4e   :  { %v205_v40 = vld [vmem:[#allocation7 + $0x1d0] sm:$0xff]  ;;  %v753_v41 = vpack.c.bf16 %v215_v35, %v206_v34  ;;  %v769_v42 = vpack.c.bf16 %v217_v37, %v208_v36  ;;  %v214_v43 = vld [vmem:[#allocation7 + $0x218] sm:$0xff]  ;;  %v216_v45 = vld [vmem:[#allocation7 + $0x228] sm:$0xff] }
  0x4f   :  { %740 = vmatpush1.bf16.msra.mxu0 %v739_v56  ;;  %v755_v46 = vpack.c.bf16 %v214_v43, %v205_v40  ;;  %v771_v47 = vpack.c.bf16 %v216_v45, %v207_v44  ;;  %v155_v48 = vld [vmem:[#allocation7 + $0x40] sm:$0xff]  ;;  %v164_v49 = vld [vmem:[#allocation7 + $0x88] sm:$0xff]  ;;  %v173_v51 = vld [vmem:[#allocation7 + $0xd0] sm:$0xff] }
  0x50   :  { %758 = vmatprep.subr.bf16.mxu0 %v757_v62  ;;  %v774_v50 = vpack.c.bf16 %v164_v49, %v155_v48  ;;  %v182_v52 = vld [vmem:[#allocation7 + $0x118] sm:$0xff]  ;;  %v191_v54 = vld [vmem:[#allocation7 + $0x160] sm:$0xff]  ;;  %v200_v55 = vld [vmem:[#allocation7 + $0x1a8] sm:$0xff] }
  0x51   :  { %v777_v53 = vpack.c.bf16 %v182_v52, %v173_v51  ;;  %v780_v56 = vpack.c.bf16 %v200_v55, %v191_v54  ;;  %v209_v57 = vld [vmem:[#allocation7 + $0x1f0] sm:$0xff]  ;;  %v218_v58 = vld [vmem:[#allocation7 + $0x238] sm:$0xff] }
  0x52   :  { %v783_v59 = vpack.c.bf16 %v218_v58, %v209_v57 }
 0x115   :  { %v142_v7 = vpop.f32.mrb[0].mxu0 }
 0x116   :  { %v143_v11 = vadd.f32 %v651_v63, %v142_v7  ;;  %v683_v12 = vpop.f32.mrb[1].mxu0  ;;  %v219_v63 = vld [vmem:[%s1020_s4] sm:$0xff] }
 0x118   :  { %v977_v17 = vmax.f32 %v143_v11, 0.0 }
 0x11a   :  { %654 = vmatmul.mubr.msk.f32.vlgmr.msra.gmra.mrb[0].mxu1 %vm268_vm2, %v977_v17  ;;  %655 = vmatmul.mubr.msk.f32.vlgmr.msra.gmra.mrb[2].mxu0 %vm268_vm2, %v977_v17 }
 0x11b   :  { %744 = vmatpush1.bf16.msra.mxu1 %v743_v13  ;;  %760 = vmatpush1.bf16.msra.mxu0 %v759_v14 }
 0x11c   :  { %746 = vmatprep.subr.bf16.mxu1 %v745_v18  ;;  %762 = vmatprep.subr.bf16.mxu0 %v761_v19 }
 0x11d   :  { %478 = vmatprep.mubr.f32.mxu1 %v899_v1  ;;  %549 = vmatprep.mubr.f32.mxu0 %v899_v1 }
 0x11f   :  { %748 = vmatpush1.bf16.msra.mxu1 %v747_v26  ;;  %764 = vmatpush1.bf16.msra.mxu0 %v763_v27 }
 0x120   :  { %750 = vmatprep.subr.bf16.mxu1 %v749_v30  ;;  %766 = vmatprep.subr.bf16.mxu0 %v765_v31  ;;  %v653_v31 = vld [vmem:[%s1020_s4 + $0x8] ss:$0 sm:$0xff] }
 0x123   :  { %752 = vmatpush1.bf16.msra.mxu1 %v751_v38  ;;  %768 = vmatpush1.bf16.msra.mxu0 %v767_v39 }
 0x124   :  { %754 = vmatprep.subr.bf16.mxu1 %v753_v41  ;;  %770 = vmatprep.subr.bf16.mxu0 %v769_v42 }
 0x127   :  { %756 = vmatpush1.bf16.msra.mxu1 %v755_v46  ;;  %772 = vmatpush1.bf16.msra.mxu0 %v771_v47 }
 0x128   :  { %773 = vmatprep.subr.bf16.mxu1 %v897_v0 }
 0x12a   :  { %656 = vmatmul.mubr.msk.f32.vlgmr.msra.gmra.mrb[2].mxu1 %vm268_vm2, %v977_v17  ;;  %657 = vmatmul.mubr.msk.f32.vlgmr.msra.gmra.mrb[4].mxu0 %vm268_vm2, %v977_v17 }
 0x12b   :  { %775 = vmatpush3.bf16.msra.mxu1 %v774_v50  ;;  %700 = vmatprep.mubr.msk.f32.mxu1 %vm898_vm0, %v899_v1  ;;  %v224_v1 = vshrl.u32 %v223_v60, 7 }
 0x12c   :  { %776 = vmatprep.subr.bf16.mxu1 %v897_v0 }
 0x12d   :  { %v225_v61 = vsub.s32 0, %v224_v1  ;;  %v233_v62 = vsub.s32 2, %v224_v1  ;;  %v229_v2 = vsub.s32 1, %v224_v1  ;;  %v237_v3 = vsub.s32 3, %v224_v1 }
 0x12e   :  { %v241_v15 = vsub.s32 4, %v224_v1  ;;  %v249_v16 = vsub.s32 6, %v224_v1  ;;  %v253_v18 = vsub.s32 7, %v224_v1 }
 0x12f   :  { %778 = vmatpush3.bf16.msra.mxu1 %v777_v53  ;;  %v226_v4 = vrot.slane %v219_v63, %v225_v61  ;;  %v234_v5 = vrot.slane %v219_v63, %v233_v62  ;;  %v230_v6 = vrot.slane %v219_v63, %v229_v2  ;;  %v238_v7 = vrot.slane %v219_v63, %v237_v3 }
 0x130   :  { %779 = vmatprep.subr.bf16.mxu1 %v897_v0  ;;  %v242_v19 = vrot.slane %v219_v63, %v241_v15  ;;  %v250_v20 = vrot.slane %v219_v63, %v249_v16  ;;  %v254_v22 = vrot.slane %v219_v63, %v253_v18 }
 0x133   :  { %781 = vmatpush3.bf16.msra.mxu1 %v780_v56 }
 0x134   :  { %782 = vmatprep.subr.bf16.mxu1 %v897_v0 }
 0x137   :  { %784 = vmatpush3.bf16.msra.mxu1 %v783_v59 }
 0x13a   :  { %701 = vmatmul.mubr.msk.f32.vlgmr.msra.gmra.mrb[4].mxu1 %vm268_vm2, %v977_v17  ;;  %v245_v17 = vsub.s32 5, %v224_v1 }
 0x13c   :  { %v246_v21 = vrot.slane %v219_v63, %v245_v17 }
 0x1ed   :  { %v338_v8 = vpop.f32.mrb[0].mxu1  ;;  %v409_v0 = vpop.f32.mrb[2].mxu0 }
 0x1ee   :  { %v339_v9 = vadd.f32 %v338_v8, %v226_v4  ;;  %v410_v10 = vadd.f32 %v409_v0, %v234_v5  ;;  %v340_v11 = vpop.f32.mrb[1].mxu1  ;;  %v411_v12 = vpop.f32.mrb[3].mxu0 }
 0x1ef   :  { %v341_v13 = vadd.f32 %v340_v11, %v230_v6  ;;  %v412_v14 = vadd.f32 %v411_v12, %v238_v7 }
 0x1f0   :  { %626 = vst [vmem:[#allocation8] sm:$0xff] %v339_v9  ;;  %628 = vst [vmem:[#allocation8 + $0x10] sm:$0xff] %v410_v10 }
 0x1f1   :  { %627 = vst [vmem:[#allocation8 + $0x8] sm:$0xff] %v341_v13  ;;  %629 = vst [vmem:[#allocation8 + $0x18] sm:$0xff] %v412_v14 }
 0x1fd   :  { %v480_v23 = vpop.f32.mrb[2].mxu1  ;;  %v551_v24 = vpop.f32.mrb[4].mxu0 }
 0x1fe   :  { %v481_v25 = vadd.f32 %v480_v23, %v242_v19  ;;  %v552_v26 = vadd.f32 %v551_v24, %v250_v20  ;;  %v482_v27 = vpop.f32.mrb[3].mxu1  ;;  %v553_v28 = vpop.f32.mrb[5].mxu0 }
 0x1ff   :  { %v483_v29 = vadd.f32 %v482_v27, %v246_v21  ;;  %v554_v30 = vadd.f32 %v553_v28, %v254_v22 }
 0x200   :  { %630 = vst [vmem:[#allocation8 + $0x20] sm:$0xff] %v481_v25  ;;  %632 = vst [vmem:[#allocation8 + $0x30] sm:$0xff] %v552_v26 }
 0x201   :  { %631 = vst [vmem:[#allocation8 + $0x28] sm:$0xff] %v483_v29  ;;  %633 = vst [vmem:[#allocation8 + $0x38] sm:$0xff] %v554_v30 }
 0x20d   :  { %v622_v32 = vpop.f32.mrb[4].mxu1 }
 0x20e   :  { %v623_v33 = vadd.f32 %v653_v31, %v622_v32  ;;  %v702_v34 = vpop.f32.mrb[5].mxu1 }
 0x210   :  { %634 = vst.msk [vmem:[#allocation8 + $0x40] sm:$0xff] %vm72_vm1, %v623_v33 }
 0x211   :  { %873 = shalt.err (!%p870_p0)
}
 0x212   :  { %s874_s15 = scalar_lea.hbm %s1021_s5, 1152 }
 0x213   :  { %p875_p1 = scmp.ne.s32.totalorder %s1021_s5, %s874_s15  ;;  %p878_p2 = scmp.lt.u32.totalorder %s874_s15, %s1021_s5 }
 0x215   :  { %p880_p3 = pnand %p878_p2, %p875_p1 }
 0x217   :  { %883 = shalt.err (!%p880_p3)
}
 0x218   :  { %644 = dma.vmem_to_hbm [thread:$0]  %s642_s11, 1152, %s1021_s5, [#allocation4]  }
 0x219   :  { %888 = dma.done.wait [#allocation4], 1152  }
 0x21a   :  { %889 = vsyncadd [#allocation4], 4294966144 }
 0x21b   :  { %648 = vsyncpa [#allocation3], 1 }
 0x21c   :  { %649 = vsyncpa [#allocation6], 1 }
 0x21d   :  { %650 = vsyncpa [#allocation4], 1 }

</bundles_post_ra>
